<compile_context>
chip_gen: v5e
topology: v5e:2x2
jax: 0.10.0
libtpu: 0.0.40
codegen_flags: <defaults>
</compile_context>

<pallas_src>
import jax
import jax.numpy as jnp
from jax import lax
from jax.experimental import pallas as pl
from jax.experimental.pallas import tpu as pltpu


D_IN, D_H1, D_H2, D_OUT = 784, 256, 64, 16


def encoder_kernel(x_ref, w1_ref, b1_ref, w2_ref, b2_ref, w3_ref, b3_ref, o_ref):
    # All three Linear+ReLU layers fused on one (TILE_B, 784) batch tile.
    # bf16 operands on the MXU, f32 accumulation, f32 bias add + ReLU on VPU.
    x = x_ref[...]                                   # bf16 (tile_b, 784)
    h1 = jnp.dot(x, w1_ref[...],
                 preferred_element_type=jnp.float32,
                 precision=lax.Precision.DEFAULT) + b1_ref[...]
    h1 = jnp.maximum(h1, 0.0)
    h2 = jnp.dot(h1.astype(jnp.bfloat16), w2_ref[...],
                 preferred_element_type=jnp.float32,
                 precision=lax.Precision.DEFAULT) + b2_ref[...]
    h2 = jnp.maximum(h2, 0.0)
    h3 = jnp.dot(h2.astype(jnp.bfloat16), w3_ref[...],
                 preferred_element_type=jnp.float32,
                 precision=lax.Precision.DEFAULT) + b3_ref[...]
    h3 = jnp.maximum(h3, 0.0)
    o_ref[...] = h3.astype(o_ref.dtype)


def _round_up(x, m):
    return ((x + m - 1) // m) * m


def _pick_tile_b(bs, max_tile_b):
    """Batch tile: multiple of 8, capped at max_tile_b, and split so the grid
    has >=2 (>=4 for big batches) steps for v7x megacore load balance."""
    rows = _round_up(bs, 8)
    if rows >= 2048:
        min_steps = 4
    elif rows >= 512:
        min_steps = 2
    else:
        min_steps = 1
    tile_b = min(max_tile_b, _round_up(pl.cdiv(rows, min_steps), 8), rows)
    return max(tile_b, 8)


def encoder_forward(x, params, *, max_tile_b=2048):
    """x: (B, C, H, W) or (B, 784). Returns (B, 16) float32."""
    bs = x.shape[0]
    # x.view(bs, -1); cast activations to bf16 for the MXU (f32 accumulate).
    x2d = x.reshape(bs, -1).astype(jnp.bfloat16)
    assert x2d.shape[1] == D_IN, f"expected flattened dim {D_IN}, got {x2d.shape[1]}"

    w1, b1, w2, b2, w3, b3 = params
    # Weights bf16 for the MXU (in a training loop, cast once outside instead).
    w1 = w1.astype(jnp.bfloat16)
    w2 = w2.astype(jnp.bfloat16)
    w3 = w3.astype(jnp.bfloat16)
    # Biases stay f32 (added to the f32 accumulators); 2D (1, out) layout.
    b1 = b1.reshape(1, -1).astype(jnp.float32)
    b2 = b2.reshape(1, -1).astype(jnp.float32)
    b3 = b3.reshape(1, -1).astype(jnp.float32)

    tile_b = _pick_tile_b(bs, max_tile_b)
    num_steps = pl.cdiv(bs, tile_b)
    grid = (num_steps,)

    # Input spec: deepen pipeline to 3 buffers when the grid is long enough
    # (helps v7x where both cores contend for HBM); default otherwise.
    if num_steps >= 3:
        x_spec = pl.BlockSpec((tile_b, D_IN), lambda i: (i, 0),
                              pipeline_mode=pl.Buffered(3))
    else:
        x_spec = pl.BlockSpec((tile_b, D_IN), lambda i: (i, 0))

    # Weights/biases: constant block index => DMA'd once, VMEM-resident.
    def const(shape):
        return pl.BlockSpec(shape, lambda i: tuple(0 for _ in shape))

    flops = 2 * bs * (D_IN * D_H1 + D_H1 * D_H2 + D_H2 * D_OUT)
    bytes_accessed = (
        2 * bs * D_IN                                        # bf16 activations
        + 2 * (D_IN * D_H1 + D_H1 * D_H2 + D_H2 * D_OUT)     # bf16 weights
        + 4 * (D_H1 + D_H2 + D_OUT)                          # f32 biases
        + 4 * bs * D_OUT                                     # f32 output
    )

    out = pl.pallas_call(
        encoder_kernel,
        out_shape=jax.ShapeDtypeStruct((bs, D_OUT), jnp.float32),
        grid=grid,
        in_specs=[
            x_spec,
            const(w1.shape), const(b1.shape),
            const(w2.shape), const(b2.shape),
            const(w3.shape), const(b3.shape),
        ],
        out_specs=pl.BlockSpec((tile_b, D_OUT), lambda i: (i, 0)),
        compiler_params=pltpu.CompilerParams(
            dimension_semantics=("parallel",),
            vmem_limit_bytes=40 << 20,
        ),
        cost_estimate=pl.CostEstimate(
            flops=flops, transcendentals=0, bytes_accessed=bytes_accessed),
    )(x2d, w1, b1, w2, b2, w3, b3)

    return out


def init_params(key):
    """Deterministic synthetic parameters with nn.Linear shapes.

    Torch Linear(in, out) has weight (out, in); we store the transpose
    (in, out) so the kernel does x @ W + b (same math as x @ W_t.T + b).
    """
    dims = [(D_IN, D_H1), (D_H1, D_H2), (D_H2, D_OUT)]
    params = []
    for d_in, d_out in dims:
        kw, kb, key = jax.random.split(key, 3)
        bound = 1.0 / jnp.sqrt(d_in)  # torch default U(-1/sqrt(in), 1/sqrt(in))
        w = jax.random.uniform(kw, (d_in, d_out), jnp.float32, -bound, bound)
        b = jax.random.uniform(kb, (d_out,), jnp.float32, -bound, bound)
        params += [w, b]
    return tuple(params)


def reference_forward(x, params):
    bs = x.shape[0]
    h = x.reshape(bs, -1).astype(jnp.float32)
    w1, b1, w2, b2, w3, b3 = params
    h = jnp.maximum(h @ w1 + b1, 0.0)
    h = jnp.maximum(h @ w2 + b2, 0.0)
    h = jnp.maximum(h @ w3 + b3, 0.0)
    return h


if __name__ == "__main__":
    key = jax.random.PRNGKey(0)
    kx, kp = jax.random.split(key)

    # MNIST-like NCHW input; forward flattens it to (B, 784).
    x = jax.random.normal(kx, (4, 1, 28, 28), dtype=jnp.float32)
    params = init_params(kp)

    out = encoder_forward(x, params)
    out = jax.block_until_ready(out)

    ref = reference_forward(x, params)
    assert out.shape == (4, D_OUT), out.shape
    # bf16 operands / f32 accumulate vs f32 reference -> loose tolerance.
    assert jnp.allclose(out, ref, atol=2e-2, rtol=2e-2), "mismatch vs reference"

    print("KERNEL_OK")
</pallas_src>

<mosaic_0001>
module attributes {stable_mosaic.version = 11 : i64} {
  func.func @encoder_kernel(%arg0: i32, %arg1: memref<8x784xbf16, #tpu.memory_space<vmem>>, %arg2: memref<784x256xbf16, #tpu.memory_space<vmem>>, %arg3: memref<1x256xf32, #tpu.memory_space<vmem>>, %arg4: memref<256x64xbf16, #tpu.memory_space<vmem>>, %arg5: memref<1x64xf32, #tpu.memory_space<vmem>>, %arg6: memref<64x16xbf16, #tpu.memory_space<vmem>>, %arg7: memref<1x16xf32, #tpu.memory_space<vmem>>, %arg8: memref<8x16xf32, #tpu.memory_space<vmem>>) attributes {dimension_semantics = [#tpu.dimension_semantics<parallel>], iteration_bounds = array<i64: 1>, scalar_prefetch = 0 : i64, scratch_operands = 0 : i64, tpu.core_type = #tpu.core_type<tc>, window_params = [{transform_indices = @transform_0, window_bounds = array<i64: 8, 784>}, {pipeline_mode = #tpu.pipeline_mode<synchronous>, transform_indices = @transform_1, window_bounds = array<i64: 784, 256>}, {pipeline_mode = #tpu.pipeline_mode<synchronous>, transform_indices = @transform_2, window_bounds = array<i64: 1, 256>}, {pipeline_mode = #tpu.pipeline_mode<synchronous>, transform_indices = @transform_3, window_bounds = array<i64: 256, 64>}, {pipeline_mode = #tpu.pipeline_mode<synchronous>, transform_indices = @transform_4, window_bounds = array<i64: 1, 64>}, {pipeline_mode = #tpu.pipeline_mode<synchronous>, transform_indices = @transform_5, window_bounds = array<i64: 64, 16>}, {pipeline_mode = #tpu.pipeline_mode<synchronous>, transform_indices = @transform_6, window_bounds = array<i64: 1, 16>}, {transform_indices = @transform_7, window_bounds = array<i64: 8, 16>}]} {
    %c0 = arith.constant 0 : index
    %c0_0 = arith.constant 0 : index
    %0 = vector.load %arg1[%c0, %c0_0] : memref<8x784xbf16, #tpu.memory_space<vmem>>, vector<8x784xbf16>
    %c0_1 = arith.constant 0 : index
    %c0_2 = arith.constant 0 : index
    %1 = vector.load %arg2[%c0_1, %c0_2] : memref<784x256xbf16, #tpu.memory_space<vmem>>, vector<784x256xbf16>
    %cst = arith.constant dense<0.000000e+00> : vector<8x256xf32>
    %2 = tpu.matmul %0, %1, %cst {dimension_numbers = #tpu.dot_dimension_numbers<[1], [0], [0], [1], [0, 0, 1, 1], [], []>} : vector<8x784xbf16>, vector<784x256xbf16>, vector<8x256xf32> -> vector<8x256xf32>
    %c0_3 = arith.constant 0 : index
    %c0_4 = arith.constant 0 : index
    %3 = vector.load %arg3[%c0_3, %c0_4] : memref<1x256xf32, #tpu.memory_space<vmem>>, vector<1x256xf32>
    %4 = vector.broadcast %3 : vector<1x256xf32> to vector<8x256xf32>
    %5 = arith.addf %2, %4 : vector<8x256xf32>
    %cst_5 = arith.constant 0.000000e+00 : f32
    %6 = vector.broadcast %cst_5 : f32 to vector<8x256xf32>
    %7 = arith.maximumf %5, %6 : vector<8x256xf32>
    %8 = arith.truncf %7 : vector<8x256xf32> to vector<8x256xbf16>
    %c0_6 = arith.constant 0 : index
    %c0_7 = arith.constant 0 : index
    %9 = vector.load %arg4[%c0_6, %c0_7] : memref<256x64xbf16, #tpu.memory_space<vmem>>, vector<256x64xbf16>
    %cst_8 = arith.constant dense<0.000000e+00> : vector<8x64xf32>
    %10 = tpu.matmul %8, %9, %cst_8 {dimension_numbers = #tpu.dot_dimension_numbers<[1], [0], [0], [1], [0, 0, 1, 1], [], []>} : vector<8x256xbf16>, vector<256x64xbf16>, vector<8x64xf32> -> vector<8x64xf32>
    %c0_9 = arith.constant 0 : index
    %c0_10 = arith.constant 0 : index
    %11 = vector.load %arg5[%c0_9, %c0_10] : memref<1x64xf32, #tpu.memory_space<vmem>>, vector<1x64xf32>
    %12 = vector.broadcast %11 : vector<1x64xf32> to vector<8x64xf32>
    %13 = arith.addf %10, %12 : vector<8x64xf32>
    %cst_11 = arith.constant 0.000000e+00 : f32
    %14 = vector.broadcast %cst_11 : f32 to vector<8x64xf32>
    %15 = arith.maximumf %13, %14 : vector<8x64xf32>
    %16 = arith.truncf %15 : vector<8x64xf32> to vector<8x64xbf16>
    %c0_12 = arith.constant 0 : index
    %c0_13 = arith.constant 0 : index
    %17 = vector.load %arg6[%c0_12, %c0_13] : memref<64x16xbf16, #tpu.memory_space<vmem>>, vector<64x16xbf16>
    %cst_14 = arith.constant dense<0.000000e+00> : vector<8x16xf32>
    %18 = tpu.matmul %16, %17, %cst_14 {dimension_numbers = #tpu.dot_dimension_numbers<[1], [0], [0], [1], [0, 0, 1, 1], [], []>} : vector<8x64xbf16>, vector<64x16xbf16>, vector<8x16xf32> -> vector<8x16xf32>
    %c0_15 = arith.constant 0 : index
    %c0_16 = arith.constant 0 : index
    %19 = vector.load %arg7[%c0_15, %c0_16] : memref<1x16xf32, #tpu.memory_space<vmem>>, vector<1x16xf32>
    %20 = vector.broadcast %19 : vector<1x16xf32> to vector<8x16xf32>
    %21 = arith.addf %18, %20 : vector<8x16xf32>
    %cst_17 = arith.constant 0.000000e+00 : f32
    %22 = vector.broadcast %cst_17 : f32 to vector<8x16xf32>
    %23 = arith.maximumf %21, %22 : vector<8x16xf32>
    %c0_18 = arith.constant 0 : index
    %c0_19 = arith.constant 0 : index
    %24 = vector.load %arg8[%c0_18, %c0_19] : memref<8x16xf32, #tpu.memory_space<vmem>>, vector<8x16xf32>
    tpu.vector_store %arg8[%c0_18, %c0_19], %23 {strides = array<i32>} : memref<8x16xf32, #tpu.memory_space<vmem>>, vector<8x16xf32>,
    return
  }
  func.func @transform_0(%arg0: i32) -> (i32, i32) {
    %c0_i32 = arith.constant 0 : i32
    %c0_i32_0 = arith.constant 0 : i32
    return %arg0, %c0_i32 : i32, i32
  }
  func.func @transform_1(%arg0: i32) -> (i32, i32) {
    %c0_i32 = arith.constant 0 : i32
    %c0_i32_0 = arith.constant 0 : i32
    %c0_i32_1 = arith.constant 0 : i32
    return %c0_i32, %c0_i32_0 : i32, i32
  }
  func.func @transform_2(%arg0: i32) -> (i32, i32) {
    %c0_i32 = arith.constant 0 : i32
    %c0_i32_0 = arith.constant 0 : i32
    %c0_i32_1 = arith.constant 0 : i32
    return %c0_i32, %c0_i32_0 : i32, i32
  }
  func.func @transform_3(%arg0: i32) -> (i32, i32) {
    %c0_i32 = arith.constant 0 : i32
    %c0_i32_0 = arith.constant 0 : i32
    %c0_i32_1 = arith.constant 0 : i32
    return %c0_i32, %c0_i32_0 : i32, i32
  }
  func.func @transform_4(%arg0: i32) -> (i32, i32) {
    %c0_i32 = arith.constant 0 : i32
    %c0_i32_0 = arith.constant 0 : i32
    %c0_i32_1 = arith.constant 0 : i32
    return %c0_i32, %c0_i32_0 : i32, i32
  }
  func.func @transform_5(%arg0: i32) -> (i32, i32) {
    %c0_i32 = arith.constant 0 : i32
    %c0_i32_0 = arith.constant 0 : i32
    %c0_i32_1 = arith.constant 0 : i32
    return %c0_i32, %c0_i32_0 : i32, i32
  }
  func.func @transform_6(%arg0: i32) -> (i32, i32) {
    %c0_i32 = arith.constant 0 : i32
    %c0_i32_0 = arith.constant 0 : i32
    %c0_i32_1 = arith.constant 0 : i32
    return %c0_i32, %c0_i32_0 : i32, i32
  }
  func.func @transform_7(%arg0: i32) -> (i32, i32) {
    %c0_i32 = arith.constant 0 : i32
    %c0_i32_0 = arith.constant 0 : i32
    return %arg0, %c0_i32 : i32, i32
  }
}

</mosaic_0001>

<bundles_post_ra>
// kernel: tpu_custom_call.1
= control target key start
LH: loop header
LB: loop body
LE: loop exit
PB: predicated region body
PF: predicated region fallthrough
CT: control target
= control target key end

     0   :  { %12 = vsyncpa [#allocation3], 0  ;;  %s1906_s0 = inlined_call_operand.vmem [shape: bf16[4,784], index: 0, kind: input, shape index: {}]   ;;  %s1907_s1 = inlined_call_operand.hbm [shape: bf16[784,256], index: 1, kind: input, shape index: {}]   ;;  %s1908_s2 = inlined_call_operand.vmem [shape: f32[1,256], index: 2, kind: input, shape index: {}]   ;;  %s1909_s3 = inlined_call_operand.vmem [shape: bf16[256,64], index: 3, kind: input, shape index: {}]   ;;  %s1910_s4 = inlined_call_operand.vmem [shape: f32[1,64], index: 4, kind: input, shape index: {}]   ;;  %s1911_s5 = inlined_call_operand.vmem [shape: bf16[64,16], index: 5, kind: input, shape index: {}]   ;;  %s1912_s6 = inlined_call_operand.vmem [shape: f32[1,16], index: 6, kind: input, shape index: {}]   ;;  %s1913_s7 = inlined_call_operand.hbm [shape: f32[4,16], index: 7, kind: output, shape index: {}]  }
   0x1   :  { %13 = vsyncpa [#allocation4], 0  ;;  %s20_s26 = sshll.u32 %s1907_s1, 4  ;;  %s1742_s27 = smov [#allocation2]   ;;  %s21_s26 = int_to_ptr.hbm [resolvable:$true] %s20_s26 }
   0x2   :  { %s22_s28 = sshll.u32 %s1742_s27, 4  ;;  %s1743_s29 = smov 128   ;;  %s23_s28 = int_to_ptr.vmem [resolvable:$true] %s22_s28 }
   0x3   :  { %s1744_s30 = smov 8  }
   0x4   :  { %28 = dma.hbm_to_vmem [thread:$0]  %s21_s26, 12544, %s23_s28, [#allocation3], %s1743_s29, %s1743_s29, %s1744_s30  }
   0x5   :  { %1738 = dma.done.wait [#allocation3], 12544  }
   0x6   :  { %1739 = vsyncadd [#allocation3], 4294954752  ;;  %v1147_v0 = vld [vmem:[#allocation2 + $0x70] sm:$0xf]  ;;  %v1579_v1 = vld [vmem:[#allocation2 + $0x74] sm:$0xf0] }
   0x7   :  { %v1275_v2 = vld [vmem:[#allocation2 + $0x170] sm:$0xf]  ;;  %v1148_v3 = vor.u32 %v1579_v1, %v1147_v0  ;;  %v1611_v4 = vld [vmem:[#allocation2 + $0x174] sm:$0xf0]  ;;  %v1139_v11 = vld [vmem:[#allocation2 + $0x60] sm:$0xf] }
   0x8   :  { %v1339_v5 = vld [vmem:[#allocation2 + $0x1f0] sm:$0xf]  ;;  %v1627_v6 = vld [vmem:[#allocation2 + $0x1f4] sm:$0xf0]  ;;  %v1276_v7 = vor.u32 %v1611_v4, %v1275_v2  ;;  %v1577_v13 = vld [vmem:[#allocation2 + $0x64] sm:$0xf0] }
   0x9   :  { %v1340_v8 = vor.u32 %v1627_v6, %v1339_v5  ;;  %v1211_v9 = vld [vmem:[#allocation2 + $0xf0] sm:$0xf]  ;;  %v1595_v10 = vld [vmem:[#allocation2 + $0xf4] sm:$0xf0]  ;;  %669 = vmatpush.bf16.msra.mxu0 %v1148_v3  ;;  %v1267_v14 = vld [vmem:[#allocation2 + $0x160] sm:$0xf]  ;;  %v1140_v16 = vor.u32 %v1577_v13, %v1139_v11 }
   0xa   :  { %v1212_v12 = vor.u32 %v1595_v10, %v1211_v9  ;;  %v1609_v15 = vld [vmem:[#allocation2 + $0x164] sm:$0xf0]  ;;  %695 = vmatpush.bf16.msra.mxu2 %v1276_v7  ;;  %v1331_v18 = vld [vmem:[#allocation2 + $0x1e0] sm:$0xf]  ;;  %v1131_v23 = vld [vmem:[#allocation2 + $0x50] sm:$0xf] }
   0xb   :  { %708 = vmatpush.bf16.msra.mxu3 %v1340_v8  ;;  %v1268_v17 = vor.u32 %v1609_v15, %v1267_v14  ;;  %v1625_v19 = vld [vmem:[#allocation2 + $0x1e4] sm:$0xf0]  ;;  %v1203_v20 = vld [vmem:[#allocation2 + $0xe0] sm:$0xf]  ;;  %v1575_v24 = vld [vmem:[#allocation2 + $0x54] sm:$0xf0] }
   0xc   :  { %682 = vmatpush.bf16.msra.mxu1 %v1212_v12  ;;  %v1332_v21 = vor.u32 %v1625_v19, %v1331_v18  ;;  %v1593_v22 = vld [vmem:[#allocation2 + $0xe4] sm:$0xf0]  ;;  %v1259_v26 = vld [vmem:[#allocation2 + $0x150] sm:$0xf]  ;;  %v1607_v27 = vld [vmem:[#allocation2 + $0x154] sm:$0xf0]  ;;  %v1132_v29 = vor.u32 %v1575_v24, %v1131_v23 }
   0xd   :  { %v1204_v25 = vor.u32 %v1593_v22, %v1203_v20  ;;  %v1323_v28 = vld [vmem:[#allocation2 + $0x1d0] sm:$0xf]  ;;  %670 = vmatpush.bf16.msra.mxu0 %v1140_v16  ;;  %v1623_v30 = vld [vmem:[#allocation2 + $0x1d4] sm:$0xf0]  ;;  %v1260_v33 = vor.u32 %v1607_v27, %v1259_v26  ;;  %v1123_v35 = vld [vmem:[#allocation2 + $0x40] sm:$0xf] }
   0xe   :  { %v1195_v31 = vld [vmem:[#allocation2 + $0xd0] sm:$0xf]  ;;  %v1591_v32 = vld [vmem:[#allocation2 + $0xd4] sm:$0xf0]  ;;  %696 = vmatpush.bf16.msra.mxu2 %v1268_v17  ;;  %v1324_v34 = vor.u32 %v1623_v30, %v1323_v28  ;;  %v1573_v36 = vld [vmem:[#allocation2 + $0x44] sm:$0xf0] }
   0xf   :  { %709 = vmatpush.bf16.msra.mxu3 %v1332_v21  ;;  %v1251_v37 = vld [vmem:[#allocation2 + $0x140] sm:$0xf]  ;;  %v1196_v38 = vor.u32 %v1591_v32, %v1195_v31  ;;  %v1605_v39 = vld [vmem:[#allocation2 + $0x144] sm:$0xf0]  ;;  %v1124_v44 = vor.u32 %v1573_v36, %v1123_v35  ;;  %v1115_v47 = vld [vmem:[#allocation2 + $0x30] sm:$0xf] }
  0x10   :  { %683 = vmatpush.bf16.msra.mxu1 %v1204_v25  ;;  %v1315_v40 = vld [vmem:[#allocation2 + $0x1c0] sm:$0xf]  ;;  %v1621_v41 = vld [vmem:[#allocation2 + $0x1c4] sm:$0xf0]  ;;  %v1252_v45 = vor.u32 %v1605_v39, %v1251_v37  ;;  %v1571_v48 = vld [vmem:[#allocation2 + $0x34] sm:$0xf0] }
  0x11   :  { %v1187_v42 = vld [vmem:[#allocation2 + $0xc0] sm:$0xf]  ;;  %v1589_v43 = vld [vmem:[#allocation2 + $0xc4] sm:$0xf0]  ;;  %671 = vmatpush.bf16.msra.mxu0 %v1132_v29  ;;  %v1316_v46 = vor.u32 %v1621_v41, %v1315_v40  ;;  %v1243_v49 = vld [vmem:[#allocation2 + $0x130] sm:$0xf]  ;;  %v1116_v56 = vor.u32 %v1571_v48, %v1115_v47 }
  0x12   :  { %697 = vmatpush.bf16.msra.mxu2 %v1260_v33  ;;  %v1188_v50 = vor.u32 %v1589_v43, %v1187_v42  ;;  %v1603_v51 = vld [vmem:[#allocation2 + $0x134] sm:$0xf0]  ;;  %v1307_v52 = vld [vmem:[#allocation2 + $0x1b0] sm:$0xf]  ;;  %v1107_v59 = vld [vmem:[#allocation2 + $0x20] sm:$0xf] }
  0x13   :  { %710 = vmatpush.bf16.msra.mxu3 %v1324_v34  ;;  %v1619_v53 = vld [vmem:[#allocation2 + $0x1b4] sm:$0xf0]  ;;  %v1179_v54 = vld [vmem:[#allocation2 + $0xb0] sm:$0xf]  ;;  %v1244_v57 = vor.u32 %v1603_v51, %v1243_v49  ;;  %v1569_v60 = vld [vmem:[#allocation2 + $0x24] sm:$0xf0] }
  0x14   :  { %684 = vmatpush.bf16.msra.mxu1 %v1196_v38  ;;  %v1587_v55 = vld [vmem:[#allocation2 + $0xb4] sm:$0xf0]  ;;  %v1308_v58 = vor.u32 %v1619_v53, %v1307_v52  ;;  %v1235_v61 = vld [vmem:[#allocation2 + $0x120] sm:$0xf]  ;;  %v1601_v63 = vld [vmem:[#allocation2 + $0x124] sm:$0xf0]  ;;  %v1108_v4 = vor.u32 %v1569_v60, %v1107_v59 }
  0x15   :  { %672 = vmatpush.bf16.msra.mxu0 %v1124_v44  ;;  %v1180_v62 = vor.u32 %v1587_v55, %v1179_v54  ;;  %v1299_v0 = vld [vmem:[#allocation2 + $0x1a0] sm:$0xf]  ;;  %v1617_v1 = vld [vmem:[#allocation2 + $0x1a4] sm:$0xf0]  ;;  %v1099_v5 = vld [vmem:[#allocation2 + $0x10] sm:$0xf]  ;;  %v1236_v7 = vor.u32 %v1601_v63, %v1235_v61 }
  0x16   :  { %698 = vmatpush.bf16.msra.mxu2 %v1252_v45  ;;  %v1171_v2 = vld [vmem:[#allocation2 + $0xa0] sm:$0xf]  ;;  %v1585_v3 = vld [vmem:[#allocation2 + $0xa4] sm:$0xf0]  ;;  %v1567_v6 = vld [vmem:[#allocation2 + $0x14] sm:$0xf0]  ;;  %v1300_v8 = vor.u32 %v1617_v1, %v1299_v0 }
  0x17   :  { %711 = vmatpush.bf16.msra.mxu3 %v1316_v46  ;;  %v1227_v9 = vld [vmem:[#allocation2 + $0x110] sm:$0xf]  ;;  %v1599_v10 = vld [vmem:[#allocation2 + $0x114] sm:$0xf0]  ;;  %v1172_v12 = vor.u32 %v1585_v3, %v1171_v2  ;;  %v1091_v16 = vld [vmem:[#allocation2] sm:$0xf]  ;;  %v1100_v19 = vor.u32 %v1567_v6, %v1099_v5 }
  0x18   :  { %685 = vmatpush.bf16.msra.mxu1 %v1188_v50  ;;  %v1291_v11 = vld [vmem:[#allocation2 + $0x190] sm:$0xf]  ;;  %v1615_v13 = vld [vmem:[#allocation2 + $0x194] sm:$0xf0]  ;;  %v1565_v17 = vld [vmem:[#allocation2 + $0x4] sm:$0xf0]  ;;  %v1228_v22 = vor.u32 %v1599_v10, %v1227_v9 }
  0x19   :  { %673 = vmatpush.bf16.msra.mxu0 %v1116_v56  ;;  %v1163_v14 = vld [vmem:[#allocation2 + $0x90] sm:$0xf]  ;;  %v1583_v15 = vld [vmem:[#allocation2 + $0x94] sm:$0xf0]  ;;  %v1219_v20 = vld [vmem:[#allocation2 + $0x100] sm:$0xf]  ;;  %v1292_v23 = vor.u32 %v1615_v13, %v1291_v11  ;;  %v1092_v33 = vor.u32 %v1565_v17, %v1091_v16 }
  0x1a   :  { %699 = vmatpush.bf16.msra.mxu2 %v1244_v57  ;;  %v44_v18 = vld [vmem:[%s1906_s0] sm:$0xff]  ;;  %v46_v21 = vld [vmem:[%s1906_s0 + $0xe] sm:$0xff]  ;;  %v1283_v25 = vld [vmem:[#allocation2 + $0x180] sm:$0xf]  ;;  %v1164_v26 = vor.u32 %v1583_v15, %v1163_v14  ;;  %vm666_vm0 = vcmask 130048   ;;  %vm1051_vm1 = vcmask 523264  }
  0x1b   :  { %712 = vmatpush.bf16.msra.mxu3 %v1308_v58  ;;  %153 = vst [vmem:[#allocation1] ss:$4 sm:$0xff] %v44_v18  ;;  %v1597_v24 = vld [vmem:[#allocation2 + $0x104] sm:$0xf0]  ;;  %v1403_v28 = vld [vmem:[#allocation2 + $0x270] sm:$0xf] }
  0x1c   :  { %686 = vmatpush.bf16.msra.mxu1 %v1180_v62  ;;  %156 = vst [vmem:[#allocation1 + $0x1] ss:$4 sm:$0xff] %v46_v21  ;;  %v1613_v27 = vld [vmem:[#allocation2 + $0x184] sm:$0xf0]  ;;  %v1643_v29 = vld [vmem:[#allocation2 + $0x274] sm:$0xf0]  ;;  %v1220_v37 = vor.u32 %v1597_v24, %v1219_v20 }
  0x1d   :  { %674 = vmatpush.bf16.msra.mxu0 %v1108_v4  ;;  %v1578_v30 = vld [vmem:[#allocation2 + $0x74] sm:$0xf]  ;;  %v1149_v31 = vld [vmem:[#allocation2 + $0x78] sm:$0xf0]  ;;  %v1155_v32 = vld [vmem:[#allocation2 + $0x80] sm:$0xf]  ;;  %v1284_v38 = vor.u32 %v1613_v27, %v1283_v25  ;;  %v1404_v41 = vor.u32 %v1643_v29, %v1403_v28 }
  0x1e   :  { %700 = vmatpush.bf16.msra.mxu2 %v1236_v7  ;;  %v1581_v34 = vld [vmem:[#allocation2 + $0x84] sm:$0xf0]  ;;  %v1475_v35 = vld [vmem:[#allocation2 + $0x300] sm:$0xf]  ;;  %v1467_v39 = vld [vmem:[#allocation2 + $0x2f0] sm:$0xf]  ;;  %v1152_v42 = vor.u32 %v1578_v30, %v1149_v31 }
  0x1f   :  { %713 = vmatpush.bf16.msra.mxu3 %v1300_v8  ;;  %v1661_v36 = vld [vmem:[#allocation2 + $0x304] sm:$0xf0]  ;;  %v1659_v40 = vld [vmem:[#allocation2 + $0x2f4] sm:$0xf0]  ;;  %v1594_v43 = vld [vmem:[#allocation2 + $0xf4] sm:$0xf]  ;;  %v1156_v46 = vor.u32 %v1581_v34, %v1155_v32 }
  0x20   :  { %687 = vmatpush.bf16.msra.mxu1 %v1172_v12  ;;  %v1213_v44 = vld [vmem:[#allocation2 + $0xf8] sm:$0xf0]  ;;  %v1395_v45 = vld [vmem:[#allocation2 + $0x260] sm:$0xf]  ;;  %v1476_v47 = vor.u32 %v1661_v36, %v1475_v35  ;;  %v1641_v48 = vld [vmem:[#allocation2 + $0x264] sm:$0xf0]  ;;  %v1468_v51 = vor.u32 %v1659_v40, %v1467_v39 }
  0x21   :  { %675 = vmatpush.bf16.msra.mxu0 %v1100_v19  ;;  %v1576_v49 = vld [vmem:[#allocation2 + $0x64] sm:$0xf]  ;;  %v1141_v50 = vld [vmem:[#allocation2 + $0x68] sm:$0xf0]  ;;  %v1459_v52 = vld [vmem:[#allocation2 + $0x2e0] sm:$0xf]  ;;  %v1216_v56 = vor.u32 %v1594_v43, %v1213_v44  ;;  %v1396_v58 = vor.u32 %v1641_v48, %v1395_v45 }
  0x22   :  { %701 = vmatpush.bf16.msra.mxu2 %v1228_v22  ;;  %v1657_v53 = vld [vmem:[#allocation2 + $0x2e4] sm:$0xf0]  ;;  %v1592_v54 = vld [vmem:[#allocation2 + $0xe4] sm:$0xf]  ;;  %v1205_v57 = vld [vmem:[#allocation2 + $0xe8] sm:$0xf0]  ;;  %v1144_v59 = vor.u32 %v1576_v49, %v1141_v50 }
  0x23   :  { %714 = vmatpush.bf16.msra.mxu3 %v1292_v23  ;;  %v1797_v55 = vld.sshfl [vmem:[#allocation1 + $0x10] sm:$0xff pattern:$0x73625140]  ;;  %v1387_v60 = vld [vmem:[#allocation2 + $0x250] sm:$0xf]  ;;  %v1460_v1 = vor.u32 %v1657_v53, %v1459_v52  ;;  %v1208_v4 = vor.u32 %v1592_v54, %v1205_v57 }
  0x24   :  { %688 = vmatpush.bf16.msra.mxu1 %v1164_v26  ;;  %v1799_v61 = vld.sshfl [vmem:[#allocation1] sm:$0xff pattern:$0x73625140]  ;;  %v1574_v63 = vld [vmem:[#allocation2 + $0x54] sm:$0xf] }
  0x25   :  { %676 = vmatpush.bf16.msra.mxu0 %v1092_v33  ;;  %v1639_v62 = vld [vmem:[#allocation2 + $0x254] sm:$0xf0]  ;;  %v1133_v0 = vld [vmem:[#allocation2 + $0x58] sm:$0xf0]  ;;  %v1451_v5 = vld [vmem:[#allocation2 + $0x2d0] sm:$0xf] }
  0x26   :  { %702 = vmatpush.bf16.msra.mxu2 %v1220_v37  ;;  %v1802_v2 = vld.sshfl [vmem:[#allocation1 + $0x18] sm:$0xff pattern:$0x73625140]  ;;  %v1804_v3 = vld.sshfl [vmem:[#allocation1 + $0x8] sm:$0xff pattern:$0x73625140]  ;;  %v1388_v7 = vor.u32 %v1639_v62, %v1387_v60  ;;  %v1136_v8 = vor.u32 %v1574_v63, %v1133_v0 }
  0x27   :  { %715 = vmatpush.bf16.msra.mxu3 %v1284_v38  ;;  %v1655_v6 = vld [vmem:[#allocation2 + $0x2d4] sm:$0xf0]  ;;  %v1590_v9 = vld [vmem:[#allocation2 + $0xd4] sm:$0xf]  ;;  %v1197_v10 = vld [vmem:[#allocation2 + $0xd8] sm:$0xf0] }
  0x28   :  { %689 = vmatpush.bf16.msra.mxu1 %v1156_v46  ;;  %677 = vmatmul.bf16.vlgmr.msra.gmra.mxu0 %v1799_v61  ;;  %v1379_v11 = vld [vmem:[#allocation2 + $0x240] sm:$0xf]  ;;  %v1637_v12 = vld [vmem:[#allocation2 + $0x244] sm:$0xf0]  ;;  %v1572_v13 = vld [vmem:[#allocation2 + $0x44] sm:$0xf]  ;;  %v1452_v15 = vor.u32 %v1655_v6, %v1451_v5  ;;  %v1200_v16 = vor.u32 %v1590_v9, %v1197_v10 }
  0x29   :  { %721 = vmatpush.bf16.msrb.mxu0 %v1404_v41  ;;  %703 = vmatmul.bf16.vlgmr.msra.gmra.mxu2 %v1797_v55  ;;  %v1125_v14 = vld [vmem:[#allocation2 + $0x48] sm:$0xf0]  ;;  %v1443_v17 = vld [vmem:[#allocation2 + $0x2c0] sm:$0xf]  ;;  %v1653_v18 = vld [vmem:[#allocation2 + $0x2c4] sm:$0xf0]  ;;  %v1380_v19 = vor.u32 %v1637_v12, %v1379_v11 }
  0x2a   :  { %754 = vmatpush.bf16.msrb.mxu2 %v1476_v47  ;;  %716 = vmatmul.bf16.vlgmr.msra.gmra.mxu3 %v1802_v2  ;;  %v1128_v20 = vor.u32 %v1572_v13, %v1125_v14  ;;  %v1588_v21 = vld [vmem:[#allocation2 + $0xc4] sm:$0xf]  ;;  %v1189_v22 = vld [vmem:[#allocation2 + $0xc8] sm:$0xf0]  ;;  %v1371_v23 = vld [vmem:[#allocation2 + $0x230] sm:$0xf]  ;;  %v1444_v27 = vor.u32 %v1653_v18, %v1443_v17 }
  0x2b   :  { %760 = vmatpush.bf16.msrb.mxu3 %v1152_v42  ;;  %690 = vmatmul.bf16.vlgmr.msra.gmra.mxu1 %v1804_v3  ;;  %v1635_v24 = vld [vmem:[#allocation2 + $0x234] sm:$0xf0]  ;;  %v1570_v25 = vld [vmem:[#allocation2 + $0x34] sm:$0xf]  ;;  %v1117_v26 = vld [vmem:[#allocation2 + $0x38] sm:$0xf0]  ;;  %v1192_v30 = vor.u32 %v1588_v21, %v1189_v22 }
  0x2c   :  { %734 = vmatpush.bf16.msrb.mxu1 %v1468_v51  ;;  %v1435_v28 = vld [vmem:[#allocation2 + $0x2b0] sm:$0xf]  ;;  %v1651_v29 = vld [vmem:[#allocation2 + $0x2b4] sm:$0xf0]  ;;  %v1586_v31 = vld [vmem:[#allocation2 + $0xb4] sm:$0xf]  ;;  %v1372_v34 = vor.u32 %v1635_v24, %v1371_v23  ;;  %v1120_v35 = vor.u32 %v1570_v25, %v1117_v26 }
  0x2d   :  { %722 = vmatpush.bf16.msrb.mxu0 %v1396_v58  ;;  %v1181_v32 = vld [vmem:[#allocation2 + $0xb8] sm:$0xf0]  ;;  %v1363_v33 = vld [vmem:[#allocation2 + $0x220] sm:$0xf]  ;;  %v1633_v36 = vld [vmem:[#allocation2 + $0x224] sm:$0xf0]  ;;  %v1436_v41 = vor.u32 %v1651_v29, %v1435_v28 }
  0x2e   :  { %773 = vmatpush.bf16.msra.mxu2 %v1216_v56  ;;  %v45_v37 = vld [vmem:[%s1906_s0 + $0x8] sm:$0x3f]  ;;  %v47_v38 = vld [vmem:[%s1906_s0 + $0x16] sm:$0x3f]  ;;  %v1184_v42 = vor.u32 %v1586_v31, %v1181_v32  ;;  %v1649_v44 = vld [vmem:[#allocation2 + $0x2a4] sm:$0xf0]  ;;  %v1364_v45 = vor.u32 %v1633_v36, %v1363_v33 }
  0x2f   :  { %761 = vmatpush.bf16.msrb.mxu3 %v1144_v59  ;;  %v1568_v39 = vld [vmem:[#allocation2 + $0x24] sm:$0xf]  ;;  %v1109_v40 = vld [vmem:[#allocation2 + $0x28] sm:$0xf0]  ;;  %159 = vst [vmem:[#allocation1 + $0x20] ss:$4 sm:$0xff] %v45_v37 }
  0x30   :  { %735 = vmatpush.bf16.msrb.mxu1 %v1460_v1  ;;  %162 = vst [vmem:[#allocation1 + $0x21] ss:$4 sm:$0xff] %v47_v38  ;;  %v1427_v43 = vld [vmem:[#allocation2 + $0x2a0] sm:$0xf]  ;;  %v1112_v46 = vor.u32 %v1568_v39, %v1109_v40  ;;  %v1584_v47 = vld [vmem:[#allocation2 + $0xa4] sm:$0xf] }
  0x31   :  { %723 = vmatpush.bf16.msrb.mxu0 %v1388_v7  ;;  %v1173_v48 = vld [vmem:[#allocation2 + $0xa8] sm:$0xf0]  ;;  %v1355_v49 = vld [vmem:[#allocation2 + $0x210] sm:$0xf]  ;;  %v1631_v50 = vld [vmem:[#allocation2 + $0x214] sm:$0xf0]  ;;  %v1428_v53 = vor.u32 %v1649_v44, %v1427_v43 }
  0x32   :  { %774 = vmatpush.bf16.msra.mxu2 %v1208_v4  ;;  %v1566_v51 = vld [vmem:[#allocation2 + $0x14] sm:$0xf]  ;;  %v1101_v52 = vld [vmem:[#allocation2 + $0x18] sm:$0xf0]  ;;  %v1419_v54 = vld [vmem:[#allocation2 + $0x290] sm:$0xf]  ;;  %v1176_v57 = vor.u32 %v1584_v47, %v1173_v48  ;;  %v1356_v62 = vor.u32 %v1631_v50, %v1355_v49 }
  0x33   :  { %762 = vmatpush.bf16.msrb.mxu3 %v1136_v8  ;;  %v1647_v56 = vld [vmem:[#allocation2 + $0x294] sm:$0xf0]  ;;  %v1582_v58 = vld [vmem:[#allocation2 + $0x94] sm:$0xf]  ;;  %v1165_v59 = vld [vmem:[#allocation2 + $0x98] sm:$0xf0]  ;;  %v1104_v63 = vor.u32 %v1566_v51, %v1101_v52 }
  0x34   :  { %736 = vmatpush.bf16.msrb.mxu1 %v1452_v15  ;;  %v1347_v60 = vld [vmem:[#allocation2 + $0x200] sm:$0xf]  ;;  %v1629_v0 = vld [vmem:[#allocation2 + $0x204] sm:$0xf0]  ;;  %v1564_v1 = vld [vmem:[#allocation2 + $0x4] sm:$0xf]  ;;  %v1420_v7 = vor.u32 %v1647_v56, %v1419_v54  ;;  %v1168_v11 = vor.u32 %v1582_v58, %v1165_v59 }
  0x35   :  { %724 = vmatpush.bf16.msrb.mxu0 %v1380_v19  ;;  %v1093_v4 = vld [vmem:[#allocation2 + $0x8] sm:$0xf0]  ;;  %v1610_v6 = vld [vmem:[#allocation2 + $0x174] sm:$0xf]  ;;  %v1277_v8 = vld [vmem:[#allocation2 + $0x178] sm:$0xf0]  ;;  %v1348_v14 = vor.u32 %v1629_v0, %v1347_v60 }
  0x36   :  { %775 = vmatpush.bf16.msra.mxu2 %v1200_v16  ;;  %v1642_v9 = vld [vmem:[#allocation2 + $0x274] sm:$0xf]  ;;  %v1405_v10 = vld [vmem:[#allocation2 + $0x278] sm:$0xf0]  ;;  %v1411_v12 = vld [vmem:[#allocation2 + $0x280] sm:$0xf]  ;;  %v1096_v15 = vor.u32 %v1564_v1, %v1093_v4  ;;  %v1280_v19 = vor.u32 %v1610_v6, %v1277_v8 }
  0x37   :  { %763 = vmatpush.bf16.msrb.mxu3 %v1128_v20  ;;  %v1815_v5 = vld.sshfl [vmem:[#allocation1 + $0x30] sm:$0xff pattern:$0x73625140]  ;;  %v1580_v16 = vld [vmem:[#allocation2 + $0x84] sm:$0xf]  ;;  %v1408_v20 = vor.u32 %v1642_v9, %v1405_v10 }
  0x38   :  { %737 = vmatpush.bf16.msrb.mxu1 %v1444_v27  ;;  %v1645_v13 = vld [vmem:[#allocation2 + $0x284] sm:$0xf0]  ;;  %v1157_v17 = vld [vmem:[#allocation2 + $0x88] sm:$0xf0]  ;;  %v1626_v18 = vld [vmem:[#allocation2 + $0x1f4] sm:$0xf] }
  0x39   :  { %725 = vmatpush.bf16.msrb.mxu0 %v1372_v34  ;;  %1481 = vmatmul.msk.bf16.vlgmr.msrb.gmra.mxu2 %vm666_vm0, %v1815_v5  ;;  %v1341_v21 = vld [vmem:[#allocation2 + $0x1f8] sm:$0xf0]  ;;  %v1658_v22 = vld [vmem:[#allocation2 + $0x2f4] sm:$0xf]  ;;  %v1412_v24 = vor.u32 %v1645_v13, %v1411_v12  ;;  %v1608_v25 = vld [vmem:[#allocation2 + $0x164] sm:$0xf]  ;;  %v1160_v27 = vor.u32 %v1580_v16, %v1157_v17 }
  0x3a   :  { %776 = vmatpush.bf16.msra.mxu2 %v1192_v30  ;;  %v1469_v23 = vld [vmem:[#allocation2 + $0x2f8] sm:$0xf0]  ;;  %v1269_v26 = vld [vmem:[#allocation2 + $0x168] sm:$0xf0]  ;;  %v1640_v28 = vld [vmem:[#allocation2 + $0x264] sm:$0xf]  ;;  %v1344_v32 = vor.u32 %v1626_v18, %v1341_v21 }
  0x3b   :  { %764 = vmatpush.bf16.msrb.mxu3 %v1120_v35  ;;  %v1397_v29 = vld [vmem:[#allocation2 + $0x268] sm:$0xf0]  ;;  %v1624_v30 = vld [vmem:[#allocation2 + $0x1e4] sm:$0xf]  ;;  %v1472_v33 = vor.u32 %v1658_v22, %v1469_v23  ;;  %v1272_v35 = vor.u32 %v1608_v25, %v1269_v26  ;;  %v1606_v38 = vld [vmem:[#allocation2 + $0x154] sm:$0xf] }
  0x3c   :  { %738 = vmatpush.bf16.msrb.mxu1 %v1436_v41  ;;  %v1819_v31 = vld.sshfl [vmem:[#allocation1 + $0x20] sm:$0xff pattern:$0x73625140]  ;;  %v1333_v34 = vld [vmem:[#allocation2 + $0x1e8] sm:$0xf0]  ;;  %v1400_v40 = vor.u32 %v1640_v28, %v1397_v29 }
  0x3d   :  { %726 = vmatpush.bf16.msrb.mxu0 %v1364_v45  ;;  %v1656_v36 = vld [vmem:[#allocation2 + $0x2e4] sm:$0xf]  ;;  %v1461_v37 = vld [vmem:[#allocation2 + $0x2e8] sm:$0xf0]  ;;  %v1261_v41 = vld [vmem:[#allocation2 + $0x158] sm:$0xf0]  ;;  %v1336_v44 = vor.u32 %v1624_v30, %v1333_v34 }
  0x3e   :  { %777 = vmatpush.bf16.msra.mxu2 %v1184_v42  ;;  %v1821_v39 = vld.sshfl [vmem:[#allocation1 + $0x28] sm:$0xff pattern:$0x73625140]  ;;  %v1638_v42 = vld [vmem:[#allocation2 + $0x254] sm:$0xf]  ;;  %v1464_v45 = vor.u32 %v1656_v36, %v1461_v37  ;;  %v1264_v47 = vor.u32 %v1606_v38, %v1261_v41 }
  0x3f   :  { %765 = vmatpush.bf16.msrb.mxu3 %v1112_v46  ;;  %v1389_v43 = vld [vmem:[#allocation2 + $0x258] sm:$0xf0]  ;;  %v1622_v46 = vld [vmem:[#allocation2 + $0x1d4] sm:$0xf]  ;;  %v1604_v52 = vld [vmem:[#allocation2 + $0x144] sm:$0xf] }
  0x40   :  { %739 = vmatpush.bf16.msrb.mxu1 %v1428_v53  ;;  %v1325_v48 = vld [vmem:[#allocation2 + $0x1d8] sm:$0xf0]  ;;  %v1654_v49 = vld [vmem:[#allocation2 + $0x2d4] sm:$0xf]  ;;  %v1392_v51 = vor.u32 %v1638_v42, %v1389_v43  ;;  %v1253_v53 = vld [vmem:[#allocation2 + $0x148] sm:$0xf0] }
  0x41   :  { %727 = vmatpush.bf16.msrb.mxu0 %v1356_v62  ;;  %v1453_v50 = vld [vmem:[#allocation2 + $0x2d8] sm:$0xf0]  ;;  %v1636_v54 = vld [vmem:[#allocation2 + $0x244] sm:$0xf]  ;;  %v1381_v56 = vld [vmem:[#allocation2 + $0x248] sm:$0xf0]  ;;  %v1256_v60 = vor.u32 %v1604_v52, %v1253_v53 }
  0x42   :  { %778 = vmatpush.bf16.msra.mxu2 %v1176_v57  ;;  %v1328_v57 = vor.u32 %v1622_v46, %v1325_v48  ;;  %v1456_v58 = vor.u32 %v1654_v49, %v1453_v50  ;;  %v1620_v59 = vld [vmem:[#allocation2 + $0x1c4] sm:$0xf]  ;;  %v1317_v62 = vld [vmem:[#allocation2 + $0x1c8] sm:$0xf0]  ;;  %v1384_v1 = vor.u32 %v1636_v54, %v1381_v56  ;;  %v1602_v4 = vld [vmem:[#allocation2 + $0x134] sm:$0xf] }
  0x43   :  { %766 = vmatpush.bf16.msrb.mxu3 %v1104_v63  ;;  %v1652_v63 = vld [vmem:[#allocation2 + $0x2c4] sm:$0xf]  ;;  %v1445_v0 = vld [vmem:[#allocation2 + $0x2c8] sm:$0xf0]  ;;  %v1245_v6 = vld [vmem:[#allocation2 + $0x138] sm:$0xf0] }
  0x44   :  { %740 = vmatpush.bf16.msrb.mxu1 %v1420_v7  ;;  %v1634_v7 = vld [vmem:[#allocation2 + $0x234] sm:$0xf]  ;;  %v1373_v8 = vld [vmem:[#allocation2 + $0x238] sm:$0xf0]  ;;  %v1448_v9 = vor.u32 %v1652_v63, %v1445_v0  ;;  %v1600_v16 = vld [vmem:[#allocation2 + $0x124] sm:$0xf] }
  0x45   :  { %728 = vmatpush.bf16.msrb.mxu0 %v1348_v14  ;;  %v1618_v10 = vld [vmem:[#allocation2 + $0x1b4] sm:$0xf]  ;;  %v1309_v12 = vld [vmem:[#allocation2 + $0x1b8] sm:$0xf0]  ;;  %v1237_v17 = vld [vmem:[#allocation2 + $0x128] sm:$0xf0] }
  0x46   :  { %779 = vmatpush.bf16.msra.mxu2 %v1168_v11  ;;  %v1248_v11 = vor.u32 %v1602_v4, %v1245_v6  ;;  %v1650_v13 = vld [vmem:[#allocation2 + $0x2b4] sm:$0xf]  ;;  %v1437_v14 = vld [vmem:[#allocation2 + $0x2b8] sm:$0xf0]  ;;  %v1632_v18 = vld [vmem:[#allocation2 + $0x224] sm:$0xf]  ;;  %v1240_v22 = vor.u32 %v1600_v16, %v1237_v17 }
  0x47   :  { %767 = vmatpush.bf16.msrb.mxu3 %v1096_v15  ;;  %v1376_v15 = vor.u32 %v1634_v7, %v1373_v8  ;;  %v1616_v21 = vld [vmem:[#allocation2 + $0x1a4] sm:$0xf]  ;;  %v1301_v23 = vld [vmem:[#allocation2 + $0x1a8] sm:$0xf0]  ;;  %v1229_v28 = vld [vmem:[#allocation2 + $0x118] sm:$0xf0] }
  0x48   :  { %741 = vmatpush.bf16.msrb.mxu1 %v1412_v24  ;;  %729 = vmatmul.bf16.vlgmr.msrb.gmra.mxu0 %v1819_v31  ;;  %v1648_v24 = vld [vmem:[#allocation2 + $0x2a4] sm:$0xf]  ;;  %v1429_v25 = vld [vmem:[#allocation2 + $0x2a8] sm:$0xf0]  ;;  %v1630_v29 = vld [vmem:[#allocation2 + $0x214] sm:$0xf] }
  0x49   :  { %786 = vmatpush.bf16.msra.mxu0 %v1280_v19  ;;  %v1312_v19 = vor.u32 %v1618_v10, %v1309_v12  ;;  %v1357_v30 = vld [vmem:[#allocation2 + $0x218] sm:$0xf0]  ;;  %v1614_v34 = vld [vmem:[#allocation2 + $0x194] sm:$0xf]  ;;  %v1596_v41 = vld [vmem:[#allocation2 + $0x104] sm:$0xf] }
  0x4a   :  { %780 = vmatpush.bf16.msra.mxu2 %v1160_v27  ;;  %768 = vmatmul.bf16.vlgmr.msrb.gmra.mxu3 %v1799_v61  ;;  %v1320_v61 = vor.u32 %v1620_v59, %v1317_v62  ;;  %v1598_v27 = vld [vmem:[#allocation2 + $0x114] sm:$0xf]  ;;  %v1293_v36 = vld [vmem:[#allocation2 + $0x198] sm:$0xf0]  ;;  %v1221_v42 = vld [vmem:[#allocation2 + $0x108] sm:$0xf0] }
  0x4b   :  { %812 = vmatpush.bf16.msra.mxu3 %v1408_v20  ;;  %742 = vmatmul.bf16.vlgmr.msrb.gmra.mxu1 %v1821_v39  ;;  %v1440_v20 = vor.u32 %v1650_v13, %v1437_v14  ;;  %v1646_v37 = vld [vmem:[#allocation2 + $0x294] sm:$0xf]  ;;  %v1421_v38 = vld [vmem:[#allocation2 + $0x298] sm:$0xf0]  ;;  %v1628_v43 = vld [vmem:[#allocation2 + $0x204] sm:$0xf]  ;;  %v1224_v49 = vor.u32 %v1596_v41, %v1221_v42 }
  0x4c   :  { %799 = vmatpush.bf16.msra.mxu1 %v1344_v32  ;;  %v1304_v32 = vor.u32 %v1616_v21, %v1301_v23  ;;  %v1477_v46 = vld [vmem:[#allocation2 + $0x308] sm:$0xf0]  ;;  %v1424_v48 = vor.u32 %v1646_v37, %v1421_v38  ;;  %v1612_v50 = vld [vmem:[#allocation2 + $0x184] sm:$0xf]  ;;  %v1669_v59 = vld [vmem:[%s1909_s3 + $0x38] sm:$0xff] }
  0x4d   :  { %787 = vmatpush.bf16.msra.mxu0 %v1272_v35  ;;  %781 = vmatmul.bf16.vlgmr.msra.gmra.mxu2 %v1804_v3  ;;  %v1365_v3 = vld [vmem:[#allocation2 + $0x228] sm:$0xf0]  ;;  %v1232_v35 = vor.u32 %v1598_v27, %v1229_v28  ;;  %v1644_v53 = vld [vmem:[#allocation2 + $0x284] sm:$0xf]  ;;  %v1662_v0 = vld [vmem:[%s1909_s3] sm:$0xff] }
  0x4e   :  { %825 = vmatpush.bf16.msrb.mxu2 %v1472_v33  ;;  %v1368_v26 = vor.u32 %v1632_v18, %v1365_v3  ;;  %v1432_v33 = vor.u32 %v1648_v24, %v1429_v25  ;;  %v1413_v54 = vld [vmem:[#allocation2 + $0x288] sm:$0xf0]  ;;  %v146_v4 = vld [vmem:[%s1908_s2] sm:$0x3]  ;;  %v1675_v16 = vld [vmem:[%s1909_s3 + $0x68] sm:$0xff] }
  0x4f   :  { %813 = vmatpush.bf16.msra.mxu3 %v1400_v40  ;;  %v1360_v40 = vor.u32 %v1630_v29, %v1357_v30  ;;  %v1673_v23 = vld [vmem:[%s1909_s3 + $0x58] sm:$0xff]  ;;  %v1672_v28 = vld [vmem:[%s1909_s3 + $0x50] sm:$0xff]  ;;  %v149_v38 = vperm.slane %v146_v4, 1 }
  0x50   :  { %800 = vmatpush.bf16.msra.mxu1 %v1336_v44  ;;  %v1349_v44 = vld [vmem:[#allocation2 + $0x208] sm:$0xf0] }
  0x51   :  { %788 = vmatpush.bf16.msra.mxu0 %v1264_v47  ;;  %v1296_v47 = vor.u32 %v1614_v34, %v1293_v36  ;;  %v1352_v52 = vor.u32 %v1628_v43, %v1349_v44 }
  0x52   :  { %826 = vmatpush.bf16.msrb.mxu2 %v1464_v45  ;;  %v1660_v45 = vld [vmem:[#allocation2 + $0x304] sm:$0xf] }
  0x53   :  { %814 = vmatpush.bf16.msra.mxu3 %v1392_v51  ;;  %v1285_v51 = vld [vmem:[#allocation2 + $0x188] sm:$0xf0]  ;;  %v1480_v56 = vor.u32 %v1660_v45, %v1477_v46 }
  0x54   :  { %801 = vmatpush.bf16.msra.mxu1 %v1328_v57  ;;  %v1288_v57 = vor.u32 %v1612_v50, %v1285_v51 }
  0x55   :  { %789 = vmatpush.bf16.msra.mxu0 %v1256_v60  ;;  %v1668_v60 = vld [vmem:[%s1909_s3 + $0x30] sm:$0xff] }
  0x56   :  { %827 = vmatpush.bf16.msrb.mxu2 %v1456_v58  ;;  %v1416_v58 = vor.u32 %v1644_v53, %v1413_v54 }
  0x57   :  { %815 = vmatpush.bf16.msra.mxu3 %v1384_v1 }
  0x58   :  { %802 = vmatpush.bf16.msra.mxu1 %v1320_v61  ;;  %v1677_v61 = vld [vmem:[%s1909_s3 + $0x78] sm:$0xff] }
  0x59   :  { %790 = vmatpush.bf16.msra.mxu0 %v1248_v11  ;;  %v1676_v11 = vld [vmem:[%s1909_s3 + $0x70] sm:$0xff] }
  0x5a   :  { %828 = vmatpush.bf16.msrb.mxu2 %v1448_v9  ;;  %v148_v9 = vperm.slane %v146_v4, 0 }
  0x5b   :  { %816 = vmatpush.bf16.msra.mxu3 %v1376_v15 }
  0x5c   :  { %803 = vmatpush.bf16.msra.mxu1 %v1312_v19  ;;  %v1674_v19 = vld [vmem:[%s1909_s3 + $0x60] sm:$0xff] }
  0x5d   :  { %791 = vmatpush.bf16.msra.mxu0 %v1240_v22 }
  0x5e   :  { %829 = vmatpush.bf16.msrb.mxu2 %v1440_v20 }
  0x5f   :  { %817 = vmatpush.bf16.msra.mxu3 %v1368_v26 }
  0x60   :  { %804 = vmatpush.bf16.msra.mxu1 %v1304_v32 }
  0x61   :  { %792 = vmatpush.bf16.msra.mxu0 %v1232_v35  ;;  %v1670_v35 = vld [vmem:[%s1909_s3 + $0x40] sm:$0xff] }
  0x62   :  { %830 = vmatpush.bf16.msrb.mxu2 %v1432_v33  ;;  %v1671_v33 = vld [vmem:[%s1909_s3 + $0x48] sm:$0xff] }
  0x63   :  { %818 = vmatpush.bf16.msra.mxu3 %v1360_v40 }
  0x64   :  { %805 = vmatpush.bf16.msra.mxu1 %v1296_v47 }
  0x65   :  { %793 = vmatpush.bf16.msra.mxu0 %v1224_v49 }
  0x66   :  { %831 = vmatpush.bf16.msrb.mxu2 %v1424_v48 }
  0x67   :  { %819 = vmatpush.bf16.msra.mxu3 %v1352_v52 }
  0x68   :  { %806 = vmatpush.bf16.msra.mxu1 %v1288_v57  ;;  %794 = vmatmul.bf16.vlgmr.msra.gmra.mxu0 %v1797_v55  ;;  %v1667_v55 = vld [vmem:[%s1909_s3 + $0x28] sm:$0xff] }
  0x69   :  { %845 = vmatpush.bf16.msrb.mxu0 %v1480_v56 }
  0x6a   :  { %820 = vmatmul.bf16.vlgmr.msra.gmra.mxu3 %v1819_v31  ;;  %832 = vmatpush.bf16.msrb.mxu2 %v1416_v58  ;;  %v1664_v31 = vld [vmem:[%s1909_s3 + $0x10] sm:$0xff] }
  0x6b   :  { %807 = vmatmul.bf16.vlgmr.msra.gmra.mxu1 %v1802_v2  ;;  %v1666_v2 = vld [vmem:[%s1909_s3 + $0x20] sm:$0xff]  ;;  %1000 = vmatpush.bf16.msrb.mxu3 %v1677_v61 }
  0x6c   :  { %987 = vmatpush.bf16.msrb.mxu1 %v1669_v59 }
  0x6d   :  { %833 = vmatmul.bf16.vlgmr.msrb.gmra.mxu2 %v1821_v39  ;;  %v1663_v39 = vld [vmem:[%s1909_s3 + $0x8] sm:$0xff] }
  0x6f   :  { %1001 = vmatpush.bf16.msrb.mxu3 %v1676_v11 }
  0x70   :  { %988 = vmatpush.bf16.msrb.mxu1 %v1668_v60  ;;  %v1681_v60 = vld [vmem:[%s1911_s5 + $0x18] sm:$0xff] }
  0x71   :  { %1059 = vmatpush.bf16.msra.mxu0 %v1681_v60 }
  0x73   :  { %1002 = vmatpush.bf16.msrb.mxu3 %v1675_v16 }
  0x74   :  { %989 = vmatpush.bf16.msrb.mxu1 %v1667_v55  ;;  %v1680_v55 = vld [vmem:[%s1911_s5 + $0x10] sm:$0xff] }
  0x75   :  { %1060 = vmatpush.bf16.msra.mxu0 %v1680_v55 }
  0x77   :  { %1003 = vmatpush.bf16.msrb.mxu3 %v1674_v19 }
  0x78   :  { %1482 = vmatmul.msk.bf16.vlgmr.msrb.gmra.mxu0 %vm666_vm0, %v1815_v5  ;;  %990 = vmatpush.bf16.msrb.mxu1 %v1666_v2  ;;  %v1665_v5 = vld [vmem:[%s1909_s3 + $0x18] sm:$0xff]  ;;  %v1679_v2 = vld [vmem:[%s1911_s5 + $0x8] sm:$0xff] }
  0x79   :  { %1061 = vmatpush.bf16.msra.mxu0 %v1679_v2 }
  0x7b   :  { %1004 = vmatpush.bf16.msrb.mxu3 %v1673_v23 }
  0x7c   :  { %991 = vmatpush.bf16.msrb.mxu1 %v1665_v5 }
  0x7f   :  { %1005 = vmatpush.bf16.msrb.mxu3 %v1672_v28 }
  0x80   :  { %992 = vmatpush.bf16.msrb.mxu1 %v1664_v31 }
  0x83   :  { %1006 = vmatpush.bf16.msrb.mxu3 %v1671_v33 }
  0x84   :  { %993 = vmatpush.bf16.msrb.mxu1 %v1663_v39  ;;  %v1678_v39 = vld [vmem:[%s1911_s5] sm:$0xff] }
  0x85   :  { %1062 = vmatpush.bf16.msra.mxu0 %v1678_v39 }
  0x87   :  { %1007 = vmatpush.bf16.msrb.mxu3 %v1670_v35 }
  0x88   :  { %994 = vmatpush.bf16.msrb.mxu1 %v1662_v0 }
  0xa5   :  { %v678_v62 = vpop.f32.mrf.mxu0 }
  0xa6   :  { %v679_v12 = vadd.f32 %v678_v62, %v148_v9  ;;  %v1688_v62 = vld [vmem:[%s1910_s4] ss:$0 sm:$0xff] }
  0xa8   :  { %v691_v63 = vpop.f32.mrf.mxu1 }
  0xa9   :  { %v692_v14 = vadd.f32 %v691_v63, %v679_v12 }
  0xac   :  { %v704_v1 = vpop.f32.mrf.mxu2 }
  0xad   :  { %v717_v6 = vpop.f32.mrf.mxu3  ;;  %v680_v7 = vpop.f32.mrf.mxu0  ;;  %v705_v15 = vadd.f32 %v704_v1, %v692_v14 }
  0xaf   :  { %v718_v18 = vadd.f32 %v717_v6, %v705_v15 }
  0xb0   :  { %v693_v8 = vpop.f32.mrf.mxu1 }
  0xb1   :  { %v1689_v8 = vld [vmem:[%s1912_s6] ss:$0 sm:$0xff] }
  0xb4   :  { %v706_v10 = vpop.f32.mrf.mxu2 }
  0xb5   :  { %v719_v13 = vpop.f32.mrf.mxu3 }
  0xbc   :  { %v756_v17 = vpop.f32.mrf.mxu2 }
  0xc4   :  { %v758_v25 = vpop.f32.mrf.mxu2 }
  0xc5   :  { %v730_v3 = vpop.f32.mrf.mxu0 }
  0xc6   :  { %v731_v20 = vadd.f32 %v730_v3, %v718_v18 }
  0xc8   :  { %v743_v21 = vpop.f32.mrf.mxu1 }
  0xc9   :  { %v744_v22 = vadd.f32 %v743_v21, %v731_v20 }
  0xcb   :  { %v757_v24 = vadd.f32 %v756_v17, %v744_v22 }
  0xcd   :  { %v851_v26 = vmax.f32 %v757_v24, 0.0  ;;  %v732_v27 = vpop.f32.mrf.mxu0  ;;  %v769_v30 = vpop.f32.mrf.mxu3 }
  0xce   :  { %v770_v40 = vadd.f32 %v769_v30, %v149_v38 }
  0xcf   :  { %v853_v29 = vpack.c.bf16 %v851_v26, %v851_v26 }
  0xd0   :  { %v745_v32 = vpop.f32.mrf.mxu1  ;;  %v782_v34 = vpop.f32.mrf.mxu2 }
  0xd1   :  { %995 = vmatmul.bf16.vlgmr.msrb.gmra.mxu1 %v853_v29  ;;  %v783_v42 = vadd.f32 %v782_v34, %v770_v40 }
  0xd5   :  { %v771_v36 = vpop.f32.mrf.mxu3 }
  0xd8   :  { %v784_v37 = vpop.f32.mrf.mxu2 }
  0xe5   :  { %v795_v41 = vpop.f32.mrf.mxu0 }
  0xe6   :  { %v796_v44 = vadd.f32 %v795_v41, %v783_v42 }
  0xe8   :  { %v808_v43 = vpop.f32.mrf.mxu1 }
  0xe9   :  { %v809_v47 = vadd.f32 %v808_v43, %v796_v44 }
  0xed   :  { %v821_v45 = vpop.f32.mrf.mxu3  ;;  %v797_v46 = vpop.f32.mrf.mxu0 }
  0xee   :  { %v822_v49 = vadd.f32 %v821_v45, %v809_v47 }
  0xf0   :  { %v834_v48 = vpop.f32.mrf.mxu2  ;;  %v810_v50 = vpop.f32.mrf.mxu1 }
  0xf1   :  { %v835_v51 = vadd.f32 %v834_v48, %v822_v49 }
  0xf5   :  { %v823_v52 = vpop.f32.mrf.mxu3  ;;  %v847_v53 = vpop.f32.mrf.mxu0 }
  0xf6   :  { %v848_v54 = vadd.f32 %v847_v53, %v835_v51 }
  0xf8   :  { %v836_v56 = vpop.f32.mrf.mxu2  ;;  %v852_v57 = vmax.f32 %v848_v54, 0.0 }
  0xfa   :  { %v854_v58 = vpack.c.bf16 %v852_v57, %v852_v57 }
  0xfc   :  { %1008 = vmatmul.bf16.vlgmr.msrb.gmra.mxu3 %v854_v58 }
  0xfd   :  { %v849_v59 = vpop.f32.mrf.mxu0 }
 0x14e   :  { %v996_v5 = vpop.f32.mrf.mxu1 }
 0x14f   :  { %v997_v63 = vadd.f32 %v1688_v62, %v996_v5 }
 0x156   :  { %v998_v31 = vpop.f32.mrf.mxu1 }
 0x17f   :  { %v1009_v0 = vpop.f32.mrf.mxu3 }
 0x180   :  { %v1010_v1 = vadd.f32 %v1009_v0, %v997_v63 }
 0x182   :  { %v1013_v4 = vmax.f32 %v1010_v1, 0.0 }
 0x184   :  { %v1014_v6 = vpack.c.bf16 %v1013_v4, %v1013_v4 }
 0x186   :  { %1563 = vmatmul.msk.bf16.vlgmr.msra.gmra.mxu0 %vm1051_vm1, %v1014_v6 }
 0x187   :  { %v1011_v7 = vpop.f32.mrf.mxu3 }
 0x203   :  { %v1064_v61 = vpop.f32.mrf.mxu0 }
 0x204   :  { %v1065_v9 = vadd.f32 %v1689_v8, %v1064_v61 }
 0x206   :  { %v1068_v10 = vmax.f32 %v1065_v9, 0.0 }
 0x208   :  { %1069 = vst.msk [vmem:[#allocation5] sm:$0xff] %vm666_vm0, %v1068_v10 }
 0x20b   :  { %v1066_v11 = vpop.f32.mrf.mxu0 }
 0x20c   :  { %1073 = vsyncadd [#allocation4], 64  ;;  %s1076_s9 = sshll.u32 %s1913_s7, 4  ;;  %s1745_s10 = smov [#allocation5]   ;;  %s1077_s9 = int_to_ptr.hbm [resolvable:$true] %s1076_s9 }
 0x20d   :  { %s1074_s11 = sshll.u32 %s1745_s10, 4  ;;  %s1746_s2 = smov 64   ;;  %s1075_s11 = int_to_ptr.vmem [resolvable:$true] %s1074_s11 }
 0x20e   :  { %s1747_s12 = smov 4  }
 0x20f   :  { %1082 = dma.vmem_to_hbm [thread:$0]  %s1075_s11, 64, %s1077_s9, [#allocation4], %s1746_s2, %s1746_s2, %s1747_s12  }
 0x210   :  { %1740 = dma.done.wait [#allocation4], 128  }
 0x211   :  { %1741 = vsyncadd [#allocation4], 4294967168 }
 0x212   :  { %1087 = vsyncpa [#allocation3], 1 }
 0x213   :  { %1088 = vsyncpa [#allocation4], 1 }

</bundles_post_ra>
